<compile_context>
chip_gen: v7x
topology: tpu7x:2x2x1
jax: 0.10.0
libtpu: 0.0.40
codegen_flags: <defaults>
</compile_context>

<pallas_src>
import math
from functools import partial

import jax
import jax.numpy as jnp
from jax import lax
from jax.experimental import pallas as pl
from jax.experimental.pallas import tpu as pltpu

LOG_2PI = math.log(2.0 * math.pi)


def _dmm_elbo_kernel(x_ref, eps_ref, w_inf_ref, b_inf_ref, w_z_ref, b_z_ref,
                     out_ref, *, time_steps, z0_mean, z0_log_var):
    m_rows, obs_dim = x_ref.shape            # m_rows = tile_b * T
    z_dim = eps_ref.shape[1]
    tile_b = m_rows // time_steps

    x_in = x_ref[...]                        # (M, Dx), storage dtype (f32 or bf16)
    eps = eps_ref[...].astype(jnp.float32)   # (M, Dz)

    # ---- inference model q(z_t | x_t): ONE fused matmul for (mean, log_var) ----
    h = jnp.dot(x_in.astype(w_inf_ref.dtype), w_inf_ref[...],
                preferred_element_type=jnp.float32)
    h = h + b_inf_ref[...].astype(jnp.float32)            # (M, 2*Dz)
    z_mean = h[:, :z_dim]
    z_log_var = h[:, z_dim:]
    z = z_mean + jnp.exp(0.5 * z_log_var) * eps            # reparameterized sample
    # TODO(synk): optionally generate eps in-kernel with pltpu.prng_seed /
    # pltpu.stateful_normal to drop one HBM input stream (changes RNG stream).

    # ---- emission p(x|z) + transition p(z'|z): ONE fused matmul ----
    g = jnp.dot(z.astype(w_z_ref.dtype), w_z_ref[...],
                preferred_element_type=jnp.float32)
    g = g + b_z_ref[...].astype(jnp.float32)               # (M, 2*Dx + 2*Dz)
    x_mean = g[:, :obs_dim]
    x_log_var = g[:, obs_dim:2 * obs_dim]
    tr_mean = g[:, 2 * obs_dim:2 * obs_dim + z_dim]
    tr_log_var = g[:, 2 * obs_dim + z_dim:]

    # ---- gaussian_nll(x_mean, x_log_var, x): partial SUM over this tile ----
    xf = x_in.astype(jnp.float32)
    nll = 0.5 * (LOG_2PI + x_log_var + (xf - x_mean) ** 2 * jnp.exp(-x_log_var))
    nll_sum = jnp.sum(nll)

    # ---- impute_transition_distribution: shift transition by one time step,
    #      use the prior (z0_mean, z0_log_var) at t == 0; then gaussian_kl ----
    q_m = z_mean.reshape(tile_b, time_steps, z_dim)
    q_lv = z_log_var.reshape(tile_b, time_steps, z_dim)
    t_m = tr_mean.reshape(tile_b, time_steps, z_dim)
    t_lv = tr_log_var.reshape(tile_b, time_steps, z_dim)
    t_idx = lax.broadcasted_iota(jnp.int32, t_m.shape, 1)
    prev_m = pltpu.roll(t_m, shift=1, axis=1)
    prev_lv = pltpu.roll(t_lv, shift=1, axis=1)
    p_m = jnp.where(t_idx == 0, jnp.float32(z0_mean), prev_m)
    p_lv = jnp.where(t_idx == 0, jnp.float32(z0_log_var), prev_lv)
    kl = 0.5 * (p_lv - q_lv
                + (jnp.exp(q_lv) + (q_m - p_m) ** 2) * jnp.exp(-p_lv) - 1.0)
    kl_sum = jnp.sum(kl)

    # ---- lane-dense per-tile partials: [0,0,0]=sum(nll), [0,0,1]=sum(kl) ----
    lane = lax.broadcasted_iota(jnp.int32, out_ref.shape, 2)
    out_ref[...] = jnp.where(lane == 0, nll_sum,
                             jnp.where(lane == 1, kl_sum, jnp.float32(0.0)))


def _largest_tile_b(batch, time_steps, obs_dim, z_dim, itemsize, requested=None,
                    vmem_budget=4 * 1024 * 1024):
    """Largest batch tile (divisor of batch, <= requested) fitting a VMEM budget.

    Budget is deliberately conservative (4 MiB working set) so the 2-deep
    BlockSpec pipeline stays well under the scoped-VMEM limits of v5e/v6e and
    the smaller 64 MiB VMEM of v7x.
    """
    # Per (b, t) row: double-buffered x/eps inputs + rough f32 intermediates.
    per_row = 2 * (obs_dim + z_dim) * itemsize + 4 * (6 * obs_dim + 10 * z_dim)
    cap = requested if requested is not None else batch
    best = 1
    for cand in range(1, batch + 1):
        if batch % cand != 0 or cand > cap:
            continue
        if cand * time_steps * per_row <= vmem_budget:
            best = cand
    return best


@partial(jax.jit, static_argnames=("z0_mean", "z0_log_var", "tile_b", "storage_dtype"))
def dmm_elbo_losses(x, eps, params, *, z0_mean=0.0, z0_log_var=0.0,
                    tile_b=None, storage_dtype=None):
    """Returns (logp_obs_loss, kl_loss) scalars; hot path in one Pallas kernel."""
    (w_zm, b_zm, w_zv, b_zv, w_em, b_em, w_ev, b_ev,
     w_tm, b_tm, w_tv, b_tv) = params
    batch, time_steps, obs_dim = x.shape
    z_dim = eps.shape[2]

    # Fuse the (mean, log_var) head pairs into two wide matmuls (free in XLA).
    w_inf = jnp.concatenate([w_zm, w_zv], axis=1)                 # (Dx, 2*Dz)
    b_inf = jnp.concatenate([jnp.reshape(b_zm, (1, -1)),
                             jnp.reshape(b_zv, (1, -1))], axis=1).astype(jnp.float32)
    w_z = jnp.concatenate([w_em, w_ev, w_tm, w_tv], axis=1)       # (Dz, 2*Dx+2*Dz)
    b_z = jnp.concatenate([jnp.reshape(b_em, (1, -1)),
                           jnp.reshape(b_ev, (1, -1)),
                           jnp.reshape(b_tm, (1, -1)),
                           jnp.reshape(b_tv, (1, -1))], axis=1).astype(jnp.float32)

    if storage_dtype is not None:   # e.g. bf16 on v6e/v7x: halves HBM traffic
        x = x.astype(storage_dtype)
        eps = eps.astype(storage_dtype)
        w_inf = w_inf.astype(storage_dtype)
        w_z = w_z.astype(storage_dtype)

    itemsize = jnp.dtype(x.dtype).itemsize
    tb = _largest_tile_b(batch, time_steps, obs_dim, z_dim, itemsize, tile_b)
    num_tiles = batch // tb
    m_tile = tb * time_steps

    # Flatten (B, T, D) -> (B*T, D) in the wrapper (free) so the kernel issues
    # single dense MXU matmuls.  Tiles cover whole batch elements (full T),
    # so the one-step time shift never crosses a block boundary.
    x2 = x.reshape(batch * time_steps, obs_dim)
    eps2 = eps.reshape(batch * time_steps, z_dim)

    kernel = partial(_dmm_elbo_kernel, time_steps=time_steps,
                     z0_mean=float(z0_mean), z0_log_var=float(z0_log_var))

    partials = pl.pallas_call(
        kernel,
        grid=(num_tiles,),
        in_specs=[
            pl.BlockSpec((m_tile, obs_dim), lambda i: (i, 0)),
            pl.BlockSpec((m_tile, z_dim), lambda i: (i, 0)),
            pl.BlockSpec(w_inf.shape, lambda i: (0, 0)),
            pl.BlockSpec(b_inf.shape, lambda i: (0, 0)),
            pl.BlockSpec(w_z.shape, lambda i: (0, 0)),
            pl.BlockSpec(b_z.shape, lambda i: (0, 0)),
        ],
        out_specs=pl.BlockSpec((1, 8, 128), lambda i: (i, 0, 0)),
        out_shape=jax.ShapeDtypeStruct((num_tiles, 8, 128), jnp.float32),
        compiler_params=pltpu.CompilerParams(
            dimension_semantics=("parallel",)),
    )(x2, eps2, w_inf, b_inf, w_z, b_z)

    # Tiny wrapper-side reduction over per-tile partial sums; divide by the
    # TRUE global count so the semantics match the module:
    #   mean(nll) * Dx == sum(nll) / (B*T);  mean(kl) * Dz == sum(kl) / (B*T)
    denom = jnp.float32(batch * time_steps)
    logp_obs_loss = jnp.sum(partials[:, 0, 0]) / denom
    kl_loss = jnp.sum(partials[:, 0, 1]) / denom
    return logp_obs_loss, kl_loss


class DMMContinuousELBO:
    """JAX/Pallas port of the PyTorch DMMContinuousELBO forward pass."""

    def __init__(self, annealing_params, rmse_eval_latent=False,
                 z0_mean=0.0, z0_log_var=0.0, tile_b=None, storage_dtype=None):
        self.annealing_params = annealing_params
        self.rmse_eval_latent = rmse_eval_latent
        self.z0_mean = z0_mean
        self.z0_log_var = z0_log_var
        self.tile_b = tile_b
        self.storage_dtype = storage_dtype

    def forward(self, params, data, eps, epoch=0):
        observation_gt = data[0]
        logp_obs_loss, kl_loss = dmm_elbo_losses(
            observation_gt, eps, params,
            z0_mean=self.z0_mean, z0_log_var=self.z0_log_var,
            tile_b=self.tile_b, storage_dtype=self.storage_dtype)

        annealing_factor = 1
        if self.annealing_params['enabled']:
            if epoch < self.annealing_params['warm_up']:
                annealing_factor = 0
            else:
                annealing_factor = min(
                    (epoch - self.annealing_params['warm_up'])
                    / self.annealing_params['n_epochs_for_full'], 1)

        total_loss = logp_obs_loss + annealing_factor * kl_loss
        # Device scalars in the logging dict (no .item()/float() => no per-step
        # host sync; convert lazily when actually logging).
        logging = {
            'Training loss': total_loss,
            'log_p observation loss': logp_obs_loss,
            'KL loss': kl_loss,
            'logp + kl loss': logp_obs_loss + kl_loss,
            'annealing_factor': annealing_factor,
            'epoch': epoch,
        }
        return total_loss, logging

    # TODO(synk): rolling_window_eval (autoregressive predict_future rollout) is
    # evaluation-only control flow and is not ported to the kernel.


def _reference_losses(x, eps, params, z0_mean, z0_log_var):
    """Pure-JAX reference of the same math, for a sanity check."""
    (w_zm, b_zm, w_zv, b_zv, w_em, b_em, w_ev, b_ev,
     w_tm, b_tm, w_tv, b_tv) = params
    lin = lambda h, w, b: jnp.einsum('btd,de->bte', h, w) + b
    z_mean, z_log_var = lin(x, w_zm, b_zm), lin(x, w_zv, b_zv)
    z = z_mean + jnp.exp(0.5 * z_log_var) * eps
    x_mean, x_log_var = lin(z, w_em, b_em), lin(z, w_ev, b_ev)
    tr_mean, tr_log_var = lin(z, w_tm, b_tm), lin(z, w_tv, b_tv)
    B, T, Dz = tr_mean.shape
    p_mean = jnp.concatenate(
        [jnp.full((B, 1, Dz), z0_mean, jnp.float32), tr_mean[:, :-1]], axis=1)
    p_log_var = jnp.concatenate(
        [jnp.full((B, 1, Dz), z0_log_var, jnp.float32), tr_log_var[:, :-1]], axis=1)
    nll = 0.5 * (LOG_2PI + x_log_var + (x - x_mean) ** 2 * jnp.exp(-x_log_var))
    kl = 0.5 * (p_log_var - z_log_var
                + (jnp.exp(z_log_var) + (z_mean - p_mean) ** 2) * jnp.exp(-p_log_var)
                - 1.0)
    return jnp.mean(nll) * x.shape[2], jnp.mean(kl) * Dz


if __name__ == "__main__":
    B, T, OBS_DIM, Z_DIM = 8, 8, 16, 8

    key = jax.random.PRNGKey(0)
    keys = jax.random.split(key, 14)

    # Ground-truth observations x_{1:T} and reparameterization noise.
    x = jax.random.normal(keys[0], (B, T, OBS_DIM), jnp.float32)
    eps = jax.random.normal(keys[1], (B, T, Z_DIM), jnp.float32)

    def init_linear(kw, kb, din, dout, scale=0.1):
        w = scale * jax.random.normal(kw, (din, dout), jnp.float32)
        b = scale * jax.random.normal(kb, (1, dout), jnp.float32)
        return w, b

    w_zm, b_zm = init_linear(keys[2], keys[3], OBS_DIM, Z_DIM)   # inference mean
    w_zv, b_zv = init_linear(keys[4], keys[5], OBS_DIM, Z_DIM)   # inference log_var
    w_em, b_em = init_linear(keys[6], keys[7], Z_DIM, OBS_DIM)   # emission mean
    w_ev, b_ev = init_linear(keys[8], keys[9], Z_DIM, OBS_DIM)   # emission log_var
    w_tm, b_tm = init_linear(keys[10], keys[11], Z_DIM, Z_DIM)   # transition mean
    w_tv, b_tv = init_linear(keys[12], keys[13], Z_DIM, Z_DIM)   # transition log_var

    params = (w_zm, b_zm, w_zv, b_zv, w_em, b_em, w_ev, b_ev,
              w_tm, b_tm, w_tv, b_tv)

    ref_logp, ref_kl = _reference_losses(x, eps, params, 0.0, 0.0)
    ref_logp_f, ref_kl_f = float(ref_logp), float(ref_kl)

    # ---- f32 path, batch-tiled grid of 2 (exercises the pipelined grid) ----
    logp, kl = dmm_elbo_losses(x, eps, params, z0_mean=0.0, z0_log_var=0.0,
                               tile_b=4)
    logp, kl = jax.block_until_ready((logp, kl))
    assert abs(ref_logp_f - float(logp)) < 1e-3 + 1e-3 * abs(ref_logp_f)
    assert abs(ref_kl_f - float(kl)) < 1e-3 + 1e-3 * abs(ref_kl_f)

    # ---- bf16 storage path (v6e/v7x: half the HBM traffic), grid of 4 ----
    logp_bf, kl_bf = dmm_elbo_losses(x, eps, params, z0_mean=0.0, z0_log_var=0.0,
                                     tile_b=2, storage_dtype=jnp.bfloat16)
    logp_bf, kl_bf = jax.block_until_ready((logp_bf, kl_bf))
    assert abs(ref_logp_f - float(logp_bf)) < 0.25 + 0.1 * abs(ref_logp_f)
    assert abs(ref_kl_f - float(kl_bf)) < 0.25 + 0.1 * abs(ref_kl_f)

    # ---- module-style forward (f32) ----
    loss_fn = DMMContinuousELBO(
        annealing_params={"enabled": True, "warm_up": 0, "n_epochs_for_full": 100},
        z0_mean=0.0, z0_log_var=0.0, tile_b=4)
    total_loss, logging = loss_fn.forward(params, [x], eps, epoch=10)
    total_loss = jax.block_until_ready(total_loss)
    assert bool(jnp.isfinite(total_loss))

    print("KERNEL_OK")
</pallas_src>

<mosaic_0001>
module attributes {stable_mosaic.version = 11 : i64} {
  func.func @_dmm_elbo_kernel(%arg0: i32, %arg1: memref<32x16xf32, #tpu.memory_space<vmem>>, %arg2: memref<32x8xf32, #tpu.memory_space<vmem>>, %arg3: memref<16x16xf32, #tpu.memory_space<vmem>>, %arg4: memref<1x16xf32, #tpu.memory_space<vmem>>, %arg5: memref<8x48xf32, #tpu.memory_space<vmem>>, %arg6: memref<1x48xf32, #tpu.memory_space<vmem>>, %arg7: memref<1x8x128xf32, #tpu.memory_space<vmem>>) attributes {dimension_semantics = [#tpu.dimension_semantics<parallel>], iteration_bounds = array<i64: 2>, scalar_prefetch = 0 : i64, scratch_operands = 0 : i64, tpu.core_type = #tpu.core_type<tc>, window_params = [{transform_indices = @transform_0, window_bounds = array<i64: 32, 16>}, {transform_indices = @transform_1, window_bounds = array<i64: 32, 8>}, {pipeline_mode = #tpu.pipeline_mode<synchronous>, transform_indices = @transform_2, window_bounds = array<i64: 16, 16>}, {pipeline_mode = #tpu.pipeline_mode<synchronous>, transform_indices = @transform_3, window_bounds = array<i64: 1, 16>}, {pipeline_mode = #tpu.pipeline_mode<synchronous>, transform_indices = @transform_4, window_bounds = array<i64: 8, 48>}, {pipeline_mode = #tpu.pipeline_mode<synchronous>, transform_indices = @transform_5, window_bounds = array<i64: 1, 48>}, {transform_indices = @transform_6, window_bounds = array<i64: 1, 8, 128>}]} {
    %c0 = arith.constant 0 : index
    %c0_0 = arith.constant 0 : index
    %0 = vector.load %arg1[%c0, %c0_0] : memref<32x16xf32, #tpu.memory_space<vmem>>, vector<32x16xf32>
    %c0_1 = arith.constant 0 : index
    %c0_2 = arith.constant 0 : index
    %1 = vector.load %arg2[%c0_1, %c0_2] : memref<32x8xf32, #tpu.memory_space<vmem>>, vector<32x8xf32>
    %c0_3 = arith.constant 0 : index
    %c0_4 = arith.constant 0 : index
    %2 = vector.load %arg3[%c0_3, %c0_4] : memref<16x16xf32, #tpu.memory_space<vmem>>, vector<16x16xf32>
    %cst = arith.constant dense<0.000000e+00> : vector<32x16xf32>
    %3 = tpu.matmul %0, %2, %cst {dimension_numbers = #tpu.dot_dimension_numbers<[1], [0], [0], [1], [0, 0, 1, 1], [], []>} : vector<32x16xf32>, vector<16x16xf32>, vector<32x16xf32> -> vector<32x16xf32>
    %c0_5 = arith.constant 0 : index
    %c0_6 = arith.constant 0 : index
    %4 = vector.load %arg4[%c0_5, %c0_6] : memref<1x16xf32, #tpu.memory_space<vmem>>, vector<1x16xf32>
    %5 = vector.broadcast %4 : vector<1x16xf32> to vector<32x16xf32>
    %6 = arith.addf %3, %5 : vector<32x16xf32>
    %7 = vector.extract_strided_slice %6 {offsets = [0, 0], sizes = [32, 8], strides = [1, 1]} : vector<32x16xf32> to vector<32x8xf32>
    %8 = vector.extract_strided_slice %6 {offsets = [0, 8], sizes = [32, 8], strides = [1, 1]} : vector<32x16xf32> to vector<32x8xf32>
    %cst_7 = arith.constant 5.000000e-01 : f32
    %9 = vector.broadcast %cst_7 : f32 to vector<32x8xf32>
    %10 = arith.mulf %9, %8 : vector<32x8xf32>
    %11 = math.exp %10 : vector<32x8xf32>
    %12 = arith.mulf %11, %1 : vector<32x8xf32>
    %13 = arith.addf %7, %12 : vector<32x8xf32>
    %c0_8 = arith.constant 0 : index
    %c0_9 = arith.constant 0 : index
    %14 = vector.load %arg5[%c0_8, %c0_9] : memref<8x48xf32, #tpu.memory_space<vmem>>, vector<8x48xf32>
    %cst_10 = arith.constant dense<0.000000e+00> : vector<32x48xf32>
    %15 = tpu.matmul %13, %14, %cst_10 {dimension_numbers = #tpu.dot_dimension_numbers<[1], [0], [0], [1], [0, 0, 1, 1], [], []>} : vector<32x8xf32>, vector<8x48xf32>, vector<32x48xf32> -> vector<32x48xf32>
    %c0_11 = arith.constant 0 : index
    %c0_12 = arith.constant 0 : index
    %16 = vector.load %arg6[%c0_11, %c0_12] : memref<1x48xf32, #tpu.memory_space<vmem>>, vector<1x48xf32>
    %17 = vector.broadcast %16 : vector<1x48xf32> to vector<32x48xf32>
    %18 = arith.addf %15, %17 : vector<32x48xf32>
    %19 = vector.extract_strided_slice %18 {offsets = [0, 0], sizes = [32, 16], strides = [1, 1]} : vector<32x48xf32> to vector<32x16xf32>
    %20 = vector.extract_strided_slice %18 {offsets = [0, 16], sizes = [32, 16], strides = [1, 1]} : vector<32x48xf32> to vector<32x16xf32>
    %21 = vector.extract_strided_slice %18 {offsets = [0, 32], sizes = [32, 8], strides = [1, 1]} : vector<32x48xf32> to vector<32x8xf32>
    %22 = vector.extract_strided_slice %18 {offsets = [0, 40], sizes = [32, 8], strides = [1, 1]} : vector<32x48xf32> to vector<32x8xf32>
    %cst_13 = arith.constant 1.83787704 : f32
    %23 = vector.broadcast %cst_13 : f32 to vector<32x16xf32>
    %24 = arith.addf %23, %20 : vector<32x16xf32>
    %25 = arith.subf %0, %19 : vector<32x16xf32>
    %26 = arith.mulf %25, %25 : vector<32x16xf32>
    %cst_14 = arith.constant 0.000000e+00 : f32
    %27 = vector.broadcast %cst_14 : f32 to vector<32x16xf32>
    %28 = arith.subf %27, %20 : vector<32x16xf32>
    %29 = math.exp %28 : vector<32x16xf32>
    %30 = arith.mulf %26, %29 : vector<32x16xf32>
    %31 = arith.addf %24, %30 : vector<32x16xf32>
    %cst_15 = arith.constant 5.000000e-01 : f32
    %32 = vector.broadcast %cst_15 : f32 to vector<32x16xf32>
    %33 = arith.mulf %32, %31 : vector<32x16xf32>
    %34 = vector.shape_cast %33 : vector<32x16xf32> to vector<1x32x16xf32>
    %cst_16 = arith.constant dense<0.000000e+00> : vector<1xf32>
    %35 = vector.multi_reduction <add>, %34, %cst_16 [1, 2] : vector<1x32x16xf32> to vector<1xf32>
    %36 = vector.shape_cast %35 : vector<1xf32> to vector<1x1x1xf32>
    %37 = vector.extract %36[0, 0, 0] : f32 from vector<1x1x1xf32>
    %38 = vector.shape_cast %7 : vector<32x8xf32> to vector<4x8x8xf32>
    %39 = vector.shape_cast %8 : vector<32x8xf32> to vector<4x8x8xf32>
    %40 = vector.shape_cast %21 : vector<32x8xf32> to vector<4x8x8xf32>
    %41 = vector.shape_cast %22 : vector<32x8xf32> to vector<4x8x8xf32>
    %42 = tpu.iota {dimensions = array<i32: 1>} : vector<4x8x8xi32>
    %c1_i32 = arith.constant 1 : i32
    %43 = tpu.dynamic_rotate %40 by %c1_i32 dim 1 : vector<4x8x8xf32>, i32 -> vector<4x8x8xf32>
    %c1_i32_17 = arith.constant 1 : i32
    %44 = tpu.dynamic_rotate %41 by %c1_i32_17 dim 1 : vector<4x8x8xf32>, i32 -> vector<4x8x8xf32>
    %c0_i32 = arith.constant 0 : i32
    %45 = vector.broadcast %c0_i32 : i32 to vector<4x8x8xi32>
    %46 = arith.cmpi eq, %42, %45 : vector<4x8x8xi32>
    %cst_18 = arith.constant 0.000000e+00 : f32
    %47 = vector.broadcast %cst_18 : f32 to vector<4x8x8xf32>
    %48 = arith.select %46, %47, %43 : vector<4x8x8xi1>, vector<4x8x8xf32>
    %c0_i32_19 = arith.constant 0 : i32
    %49 = vector.broadcast %c0_i32_19 : i32 to vector<4x8x8xi32>
    %50 = arith.cmpi eq, %42, %49 : vector<4x8x8xi32>
    %cst_20 = arith.constant 0.000000e+00 : f32
    %51 = vector.broadcast %cst_20 : f32 to vector<4x8x8xf32>
    %52 = arith.select %50, %51, %44 : vector<4x8x8xi1>, vector<4x8x8xf32>
    %53 = arith.subf %52, %39 : vector<4x8x8xf32>
    %54 = math.exp %39 : vector<4x8x8xf32>
    %55 = arith.subf %38, %48 : vector<4x8x8xf32>
    %56 = arith.mulf %55, %55 : vector<4x8x8xf32>
    %57 = arith.addf %54, %56 : vector<4x8x8xf32>
    %cst_21 = arith.constant 0.000000e+00 : f32
    %58 = vector.broadcast %cst_21 : f32 to vector<4x8x8xf32>
    %59 = arith.subf %58, %52 : vector<4x8x8xf32>
    %60 = math.exp %59 : vector<4x8x8xf32>
    %61 = arith.mulf %57, %60 : vector<4x8x8xf32>
    %62 = arith.addf %53, %61 : vector<4x8x8xf32>
    %cst_22 = arith.constant 1.000000e+00 : f32
    %63 = vector.broadcast %cst_22 : f32 to vector<4x8x8xf32>
    %64 = arith.subf %62, %63 : vector<4x8x8xf32>
    %cst_23 = arith.constant 5.000000e-01 : f32
    %65 = vector.broadcast %cst_23 : f32 to vector<4x8x8xf32>
    %66 = arith.mulf %65, %64 : vector<4x8x8xf32>
    %67 = vector.shape_cast %66 : vector<4x8x8xf32> to vector<1x4x8x8xf32>
    %cst_24 = arith.constant dense<0.000000e+00> : vector<1xf32>
    %68 = vector.multi_reduction <add>, %67, %cst_24 [1, 2, 3] : vector<1x4x8x8xf32> to vector<1xf32>
    %69 = vector.shape_cast %68 : vector<1xf32> to vector<1x1x1x1xf32>
    %70 = vector.extract %69[0, 0, 0, 0] : f32 from vector<1x1x1x1xf32>
    %71 = tpu.iota {dimensions = array<i32: 2>} : vector<1x8x128xi32>
    %c0_i32_25 = arith.constant 0 : i32
    %72 = vector.broadcast %c0_i32_25 : i32 to vector<1x8x128xi32>
    %73 = arith.cmpi eq, %71, %72 : vector<1x8x128xi32>
    %c1_i32_26 = arith.constant 1 : i32
    %74 = vector.broadcast %c1_i32_26 : i32 to vector<1x8x128xi32>
    %75 = arith.cmpi eq, %71, %74 : vector<1x8x128xi32>
    %cst_27 = arith.constant 0.000000e+00 : f32
    %76 = vector.broadcast %70 : f32 to vector<1x8x128xf32>
    %77 = vector.broadcast %cst_27 : f32 to vector<1x8x128xf32>
    %78 = arith.select %75, %76, %77 : vector<1x8x128xi1>, vector<1x8x128xf32>
    %79 = vector.broadcast %37 : f32 to vector<1x8x128xf32>
    %80 = arith.select %73, %79, %78 : vector<1x8x128xi1>, vector<1x8x128xf32>
    %c0_28 = arith.constant 0 : index
    %c0_29 = arith.constant 0 : index
    %c0_30 = arith.constant 0 : index
    %81 = vector.load %arg7[%c0_28, %c0_29, %c0_30] : memref<1x8x128xf32, #tpu.memory_space<vmem>>, vector<1x8x128xf32>
    tpu.vector_store %arg7[%c0_28, %c0_29, %c0_30], %80 {strides = array<i32>} : memref<1x8x128xf32, #tpu.memory_space<vmem>>, vector<1x8x128xf32>,
    return
  }
  func.func @transform_0(%arg0: i32) -> (i32, i32) {
    %c0_i32 = arith.constant 0 : i32
    %c0_i32_0 = arith.constant 0 : i32
    return %arg0, %c0_i32 : i32, i32
  }
  func.func @transform_1(%arg0: i32) -> (i32, i32) {
    %c0_i32 = arith.constant 0 : i32
    %c0_i32_0 = arith.constant 0 : i32
    return %arg0, %c0_i32 : i32, i32
  }
  func.func @transform_2(%arg0: i32) -> (i32, i32) {
    %c0_i32 = arith.constant 0 : i32
    %c0_i32_0 = arith.constant 0 : i32
    %c0_i32_1 = arith.constant 0 : i32
    return %c0_i32, %c0_i32_0 : i32, i32
  }
  func.func @transform_3(%arg0: i32) -> (i32, i32) {
    %c0_i32 = arith.constant 0 : i32
    %c0_i32_0 = arith.constant 0 : i32
    %c0_i32_1 = arith.constant 0 : i32
    return %c0_i32, %c0_i32_0 : i32, i32
  }
  func.func @transform_4(%arg0: i32) -> (i32, i32) {
    %c0_i32 = arith.constant 0 : i32
    %c0_i32_0 = arith.constant 0 : i32
    %c0_i32_1 = arith.constant 0 : i32
    return %c0_i32, %c0_i32_0 : i32, i32
  }
  func.func @transform_5(%arg0: i32) -> (i32, i32) {
    %c0_i32 = arith.constant 0 : i32
    %c0_i32_0 = arith.constant 0 : i32
    %c0_i32_1 = arith.constant 0 : i32
    return %c0_i32, %c0_i32_0 : i32, i32
  }
  func.func @transform_6(%arg0: i32) -> (i32, i32, i32) {
    %c0_i32 = arith.constant 0 : i32
    %c0_i32_0 = arith.constant 0 : i32
    %c0_i32_1 = arith.constant 0 : i32
    return %arg0, %c0_i32, %c0_i32_0 : i32, i32, i32
  }
}

</mosaic_0001>

<bundles_post_ra>
// kernel: dmm_elbo_losses.1
= control target key start
LH: loop header
LB: loop body
LE: loop exit
PB: predicated region body
PF: predicated region fallthrough
CT: control target
= control target key end

     0   :  { %s1058_s21 = smov 0   ;;  %s1244_s0 = inlined_call_operand.vmem [shape: f32[64,16], index: 0, kind: input, shape index: {}]   ;;  %s1245_s1 = inlined_call_operand.vmem [shape: f32[64,8], index: 1, kind: input, shape index: {}]   ;;  %s1246_s2 = inlined_call_operand.vmem [shape: f32[16,16], index: 2, kind: input, shape index: {}]   ;;  %s1247_s3 = inlined_call_operand.vmem [shape: f32[1,16], index: 3, kind: input, shape index: {}]   ;;  %s1248_s4 = inlined_call_operand.vmem [shape: f32[8,48], index: 4, kind: input, shape index: {}]   ;;  %s1249_s5 = inlined_call_operand.vmem [shape: f32[1,48], index: 5, kind: input, shape index: {}]   ;;  %s1250_s6 = inlined_call_operand.vmem [shape: f32[2,8,128], index: 6, kind: output, shape index: {}]  }
   0x1 LB: > { %s1064_s22 = sadd.s32 4294967295, %s1015_s21   ;;  %p904_p0 = scmp.ge.s32.totalorder %s1015_s21, 1  ;;  %s1015_s21 = sphi %s1058_s21, %s16_s21  }
   0x2   : > { %p224_p1 = scmp.lt.s32.totalorder %s1015_s21, 3 }
   0x4   : > { %p225_p2 = pnand %p904_p0, %p224_p1 }
   0x5   : > { %v282_v0 = vld [vmem:[%s1246_s2] sm:$0xff] (!%p225_p2)  ;;  %v283_v1 = vld [vmem:[%s1246_s2 + $0x8] sm:$0xff] (!%p225_p2)  ;;  %s905_s27 = sshll.u32 (!%p225_p2), %s1064_s22, 2  ;;  %vm291_vm0 = vcmask (!%p225_p2), 130048   ;;  %s1017_s11 = smov (!%p225_p2), 8   ;;  %vm449_vm1 = vcmask (!%p225_p2), 64512  }
   0x6   : > { %228 = sbr.rel (%p225_p2) target bundleno = 1183 (0x49f), region = 44  ;;  %v955_v2 = vpack.c.bf16 (!%p225_p2), %v283_v1, %v282_v0  ;;  %p259_p3 = scmp.lt.s32.totalorder (!%p225_p2), %s905_s27, 7  ;;  %v910_v11 = vld [vmem:[%s1247_s3] ss:$0 sm:$0xff] (!%p225_p2) }
   0x7   : > { %v441_v26 = vld [vmem:[%s1248_s4] sm:$0xff] (!%p225_p2)  ;;  %s1018_s16 = smov (!%p225_p2), 120   ;;  %s1019_s19 = smov (!%p225_p2), 88  }
   0x8   : > { %956 = vmatprep.subr.bf16.mxu0 (!%p225_p2), %v955_v2  ;;  %947 = vmatprep.subr.mxu1 (!%p225_p2), %v441_v26  ;;  %v915_v49 = vld [vmem:[%s1249_s5] ss:$0 sm:$0xff] (!%p225_p2)  ;;  %s1020_s20 = smov (!%p225_p2), 96   ;;  %s1021_s23 = smov (!%p225_p2), 112  }
   0x9   : > { %958 = vmatpush3.bf16.msra.mxu0 (!%p225_p2), %v955_v2  ;;  %948 = vmatpush3.msra.mxu1 (!%p225_p2), %v441_v26  ;;  %s1022_s24 = smov (!%p225_p2), 16   ;;  %p270_p4 = scmp.lt.s32.totalorder (!%p225_p2), %s1064_s22, 1 }
   0xd   : > { %s1252_s27 = smov (!%p259_p3, %s905_s27), 7  ;;  %s1254_s22 = smov (!%p270_p4, %s1064_s22), 1 }
   0xe   : > { %s906_s28 = sshll.u32 %s1252_s27, 3  ;;  %s909_s25 = sshll.u32 %s1254_s22, 3 }
   0xf   : > { %s262_s7 = scalar_lea.vmem %s1244_s0, %s906_s28  ;;  %s268_s10 = scalar_lea.vmem %s1245_s1, %s906_s28 }
  0x10   : > { %v1081_v3 = vld [vmem:[%s262_s7] sm:$0xff]  ;;  %v1083_v4 = vld [vmem:[%s262_s7 + $0x8] sm:$0xff]  ;;  %v1085_v5 = vld [vmem:[%s262_s7 + $0x10] sm:$0xff]  ;;  %s273_s30 = scalar_lea.vmem %s1250_s6, %s909_s25 }
  0x11   : > { %941 = vmatprep.mubr.msk.f32.mxu0 %vm291_vm0, %v1081_v3  ;;  %v278_v6 = vld [vmem:[%s268_s10] sm:$0xff]  ;;  %v280_v7 = vld [vmem:[%s268_s10 + $0x10] sm:$0xff]  ;;  %v1094_v8 = vld [vmem:[%s262_s7 + $0x18] sm:$0xff] }
  0x12   : > { %942 = vmatmul.mubr.msk.f32.vlgmr.msra.gmra.mrb[0].mxu0 %vm291_vm0, %v1083_v4  ;;  %405 = vrot.lane.b32.xlu0 %v278_v6, %s1017_s11  ;;  %v279_v9 = vld [vmem:[%s268_s10 + $0x8] sm:$0xff]  ;;  %v281_v10 = vld [vmem:[%s268_s10 + $0x18] sm:$0xff] }
  0x13   : > { %944 = vmatprep.mubr.msk.f32.mxu0 %vm291_vm0, %v1085_v5  ;;  %409 = vrot.lane.b32.xlu1 %v280_v7, %s1017_s11 }
  0x16   : > { %945 = vmatmul.mubr.msk.f32.gmra.mrb[2].mxu0 %vm291_vm0, %v1094_v8  ;;  %407 = vrot.lane.b32.xlu0 %v279_v9, %s1017_s11 }
  0x17   : > { %411 = vrot.lane.b32.xlu1 %v281_v10, %s1017_s11  ;;  %v647_v10 = vlaneseq }
  0x84   : > { %v406_v27 = vpop.permute.xlu0 %405 }
  0x85   : > { %v410_v30 = vpop.permute.xlu1 %409 }
  0x88   : > { %v408_v31 = vpop.permute.xlu0 %407 }
  0x89   : > { %v412_v36 = vpop.permute.xlu1 %411 }
  0xe5   : > { %v943_v12 = vpop.f32.mrb[0].mxu0 }
  0xe6   : > { %v1104_v13 = vadd.f32 %v943_v12, %v910_v11  ;;  %v370_v14 = vpop.f32.mrb[1].mxu0 }
  0xe7   : > { %v1106_v15 = vadd.f32 %v910_v11, %v370_v14 }
  0xe8   : > { %v390_v16 = vmul.f32 0.5, %v1104_v13 }
  0xe9   : > { %v946_v17 = vpop.f32.mrb[2].mxu0  ;;  %v389_v18 = vmul.f32 0.5, %v1106_v15 }
  0xea   : > { %v1110_v19 = vadd.f32 %v946_v17, %v910_v11  ;;  %v380_v20 = vpop.f32.mrb[3].mxu0  ;;  %v395_v21 = vmul.f32 1.442695, %v390_v16 }
  0xeb   : > { %v1112_v22 = vadd.f32 %v910_v11, %v380_v20  ;;  %v393_v23 = vmul.f32 1.442695, %v389_v18  ;;  %v648_v11 = vshrl.u32 %v647_v10, 7 }
  0xec   : > { %977 = vpow2.f32 %v395_v21  ;;  %v392_v24 = vmul.f32 0.5, %v1110_v19 }
  0xed   : > { %979 = vpow2.f32 %v393_v23  ;;  %v391_v25 = vmul.f32 0.5, %v1112_v22  ;;  %vm685_vm2 = vcmp.eq.s32.totalorder %v648_v11, 0 }
  0xee   : > { %v399_v28 = vmul.f32 1.442695, %v392_v24 }
  0xef   : > { %v397_v29 = vmul.f32 1.442695, %v391_v25 }
  0xf0   : > { %981 = vpow2.f32 %v399_v28 }
  0xf1   : > { %983 = vpow2.f32 %v397_v29 }
  0xf6   : > { %v978_v32 = vpop.eup %977 }
  0xf7   : > { %v980_v33 = vpop.eup %979  ;;  %v418_v34 = vmul.f32 %v978_v32, %v408_v31 }
  0xf8   : > { %v417_v35 = vmul.f32 %v980_v33, %v406_v27 }
  0xf9   : > { %427 = vrot.lane.b32.xlu1 %v418_v34, %s1018_s16 }
  0xfa   : > { %v982_v37 = vpop.eup %981  ;;  %425 = vrot.lane.b32.xlu0 %v417_v35, %s1018_s16 }
  0xfb   : > { %v984_v38 = vpop.eup %983  ;;  %v420_v39 = vmul.f32 %v982_v37, %v412_v36 }
  0xfc   : > { %v419_v40 = vmul.f32 %v984_v38, %v410_v30 }
  0xfd   : > { %431 = vrot.lane.b32.xlu1 %v420_v39, %s1018_s16 }
  0xfe   : > { %429 = vrot.lane.b32.xlu0 %v419_v40, %s1018_s16 }
 0x16b   : > { %v428_v41 = vpop.permute.xlu1 %427 }
 0x16c   : > { %v426_v42 = vpop.permute.xlu0 %425  ;;  %v438_v44 = vadd.f32 %v428_v41, %v1104_v13 }
 0x16d   : > { %v437_v43 = vadd.f32 %v426_v42, %v1106_v15 }
 0x16f   : > { %v432_v45 = vpop.permute.xlu1 %431  ;;  %949 = vmatprep.mubr.msk.f32.mxu1 %vm449_vm1, %v437_v43 }
 0x170   : > { %950 = vmatmul.mubr.msk.f32.vlgmr.msra.gmra.mrb[0].mxu1 %vm449_vm1, %v438_v44  ;;  %v430_v46 = vpop.permute.xlu0 %429  ;;  %v440_v48 = vadd.f32 %v432_v45, %v1110_v19 }
 0x171   : > { %v439_v47 = vadd.f32 %v430_v46, %v1112_v22 }
 0x173   : > { %952 = vmatprep.mubr.msk.f32.mxu1 %vm449_vm1, %v439_v47 }
 0x174   : > { %953 = vmatmul.mubr.msk.f32.gmra.mrb[2].mxu1 %vm449_vm1, %v440_v48 }
 0x243   : > { %v951_v50 = vpop.f32.mrb[0].mxu1 }
 0x244   : > { %v1134_v51 = vadd.f32 %v951_v50, %v915_v49  ;;  %v528_v52 = vpop.f32.mrb[1].mxu1 }
 0x245   : > { %v1136_v53 = vadd.f32 %v915_v49, %v528_v52 }
 0x246   : > { %v560_v54 = vsub.f32 0.0, %v1134_v51  ;;  %671 = vrot.lane.b32.xlu1 %v1134_v51, %s1019_s19 }
 0x247   : > { %v559_v55 = vsub.f32 0.0, %v1136_v53  ;;  %669 = vrot.lane.b32.xlu0 %v1136_v53, %s1019_s19  ;;  %v954_v56 = vpop.f32.mrb[2].mxu1  ;;  %v551_v52 = vsub.f32 %v1081_v3, %v1136_v53 }
 0x248   : > { %v565_v57 = vmul.f32 1.442695, %v560_v54  ;;  %v1142_v58 = vadd.f32 %v954_v56, %v915_v49  ;;  %v538_v59 = vpop.f32.mrb[3].mxu1  ;;  %v552_v56 = vsub.f32 %v1083_v4, %v1134_v51 }
 0x249   : > { %v563_v60 = vmul.f32 1.442695, %v559_v55  ;;  %v1144_v61 = vadd.f32 %v915_v49, %v538_v59 }
 0x24a   : > { %985 = vpow2.f32 %v565_v57  ;;  %v562_v62 = vsub.f32 0.0, %v1142_v58  ;;  %675 = vrot.lane.b32.xlu1 %v1142_v58, %s1019_s19  ;;  %v556_v3 = vmul.f32 %v552_v56, %v552_v56 }
 0x24b   : > { %987 = vpow2.f32 %v563_v60  ;;  %v561_v63 = vsub.f32 0.0, %v1144_v61  ;;  %673 = vrot.lane.b32.xlu0 %v1144_v61, %s1019_s19 }
 0x24c   : > { %v569_v0 = vmul.f32 1.442695, %v562_v62 }
 0x24d   : > { %v567_v1 = vmul.f32 1.442695, %v561_v63 }
 0x24e   : > { %989 = vpow2.f32 %v569_v0  ;;  %655 = vrot.lane.b32.xlu1 %v1134_v51, %s1020_s20  ;;  %v555_v0 = vmul.f32 %v551_v52, %v551_v52  ;;  %v550_v52 = vadd.f32 1.837877, %v1142_v58 }
 0x24f   : > { %991 = vpow2.f32 %v567_v1  ;;  %653 = vrot.lane.b32.xlu0 %v1136_v53, %s1020_s20 }
 0x252   : > { %659 = vrot.lane.b32.xlu1 %v1142_v58, %s1020_s20 }
 0x253   : > { %657 = vrot.lane.b32.xlu0 %v1144_v61, %s1020_s20 }
 0x254   : > { %v986_v2 = vpop.eup %985 }
 0x255   : > { %v988_v6 = vpop.eup %987 }
 0x256   : > { %577 = vrot.lane.b32.xlu1 %v986_v2, %s1021_s23 }
 0x257   : > { %575 = vrot.lane.b32.xlu0 %v988_v6, %s1021_s23 }
 0x258   : > { %v990_v7 = vpop.eup %989 }
 0x259   : > { %v992_v9 = vpop.eup %991 }
 0x25a   : > { %581 = vrot.lane.b32.xlu1 %v990_v7, %s1021_s23  ;;  %v554_v7 = vsub.f32 %v1094_v8, %v1142_v58  ;;  %v716_v8 = vmul.f32 1.442695, %v1104_v13 }
 0x25b   : > { %579 = vrot.lane.b32.xlu0 %v992_v9, %s1021_s23  ;;  %v553_v9 = vsub.f32 %v1085_v5, %v1144_v61  ;;  %v714_v5 = vmul.f32 1.442695, %v1106_v15 }
 0x2b8   : > { %v672_v12 = vpop.permute.xlu1 %671 }
 0x2b9   : > { %v670_v14 = vpop.permute.xlu0 %669  ;;  %v682_v17 = vrot.slane %v672_v12, 7 }
 0x2ba   : > { %v681_v16 = vrot.slane %v670_v14, 7 }
 0x2bb   : > { %v1163_v24 = vsel %vm685_vm2, 0.0, %v682_v17 }
 0x2bc   : > { %v676_v18 = vpop.permute.xlu1 %675  ;;  %v1160_v21 = vsel %vm685_vm2, 0.0, %v681_v16  ;;  %v751_v30 = vsub.f32 0.0, %v1163_v24  ;;  %v558_v16 = vmul.f32 %v554_v7, %v554_v7 }
 0x2bd   : > { %v674_v20 = vpop.permute.xlu0 %673  ;;  %v684_v23 = vrot.slane %v676_v18, 7  ;;  %v750_v27 = vsub.f32 0.0, %v1160_v21  ;;  %v557_v18 = vmul.f32 %v553_v9, %v553_v9 }
 0x2be   : > { %v683_v25 = vrot.slane %v674_v20, 7  ;;  %v756_v43 = vmul.f32 1.442695, %v751_v30 }
 0x2bf   : > { %v1168_v31 = vsel %vm685_vm2, 0.0, %v684_v23  ;;  %v754_v38 = vmul.f32 1.442695, %v750_v27 }
 0x2c0   : > { %v656_v26 = vpop.permute.xlu1 %655  ;;  %v1171_v33 = vsel %vm685_vm2, 0.0, %v683_v25  ;;  %v753_v39 = vsub.f32 0.0, %v1168_v31 }
 0x2c1   : > { %v666_v28 = vrot.slane %v656_v26, 7  ;;  %v654_v29 = vpop.permute.xlu0 %653  ;;  %v752_v44 = vsub.f32 0.0, %v1171_v33  ;;  %993 = vpow2.f32 %v754_v38  ;;  %v720_v26 = vmul.f32 1.442695, %v1110_v19 }
 0x2c2   : > { %v665_v32 = vrot.slane %v654_v29, 7  ;;  %v760_v54 = vmul.f32 1.442695, %v753_v39  ;;  %995 = vpow2.f32 %v756_v43  ;;  %v548_v43 = vadd.f32 1.837877, %v1134_v51 }
 0x2c3   : > { %v687_v34 = vsel %vm685_vm2, 0.0, %v666_v28  ;;  %v758_v57 = vmul.f32 1.442695, %v752_v44  ;;  %v718_v28 = vmul.f32 1.442695, %v1112_v22 }
 0x2c4   : > { %v723_v35 = vsub.f32 %v1104_v13, %v687_v34  ;;  %v686_v36 = vsel %vm685_vm2, 0.0, %v665_v32  ;;  %v660_v37 = vpop.permute.xlu1 %659  ;;  %997 = vpow2.f32 %v760_v54  ;;  %v547_v44 = vadd.f32 1.837877, %v1136_v53 }
 0x2c5   : > { %v722_v40 = vsub.f32 %v1106_v15, %v686_v36  ;;  %v668_v41 = vrot.slane %v660_v37, 7  ;;  %v658_v42 = vpop.permute.xlu0 %657  ;;  %999 = vpow2.f32 %v758_v57  ;;  %v549_v51 = vadd.f32 1.837877, %v1144_v61 }
 0x2c6   : > { %v667_v45 = vrot.slane %v658_v42, 7  ;;  %v727_v46 = vmul.f32 %v723_v35, %v723_v35  ;;  %1001 = vpow2.f32 %v714_v5 }
 0x2c7   : > { %v689_v47 = vsel %vm685_vm2, 0.0, %v668_v41  ;;  %v726_v48 = vmul.f32 %v722_v40, %v722_v40  ;;  %1003 = vpow2.f32 %v716_v8 }
 0x2c8   : > { %v725_v49 = vsub.f32 %v1110_v19, %v689_v47  ;;  %v688_v50 = vsel %vm685_vm2, 0.0, %v667_v45  ;;  %736 = vrot.lane.b32.xlu1 %v727_v46, %s1017_s11  ;;  %v578_v63 = vpop.permute.xlu1 %577  ;;  %1005 = vpow2.f32 %v720_v26 }
 0x2c9   : > { %v724_v55 = vsub.f32 %v1112_v22, %v688_v50  ;;  %734 = vrot.lane.b32.xlu0 %v726_v48, %s1017_s11  ;;  %v576_v60 = vpop.permute.xlu0 %575  ;;  %v588_v2 = vmul.f32 %v578_v63, %v556_v3  ;;  %1007 = vpow2.f32 %v718_v28 }
 0x2ca   : > { %v729_v59 = vmul.f32 %v725_v49, %v725_v49  ;;  %v587_v1 = vmul.f32 %v576_v60, %v555_v0 }
 0x2cb   : > { %v728_v62 = vmul.f32 %v724_v55, %v724_v55  ;;  %v994_v4 = vpop.eup %993 }
 0x2cc   : > { %740 = vrot.lane.b32.xlu1 %v729_v59, %s1017_s11  ;;  %v996_v6 = vpop.eup %995  ;;  %v582_v12 = vpop.permute.xlu1 %581 }
 0x2cd   : > { %738 = vrot.lane.b32.xlu0 %v728_v62, %s1017_s11  ;;  %v580_v17 = vpop.permute.xlu0 %579  ;;  %v590_v20 = vmul.f32 %v582_v12, %v558_v16 }
 0x2ce   : > { %v998_v11 = vpop.eup %997  ;;  %v589_v23 = vmul.f32 %v580_v17, %v557_v18 }
 0x2cf   : > { %v1000_v14 = vpop.eup %999 }
 0x2d0   : > { %595 = vrot.lane.b32.xlu1 %v587_v1, %s1022_s24  ;;  %v1002_v35 = vpop.eup %1001 }
 0x2d1   : > { %597 = vrot.lane.b32.xlu0 %v588_v2, %s1022_s24  ;;  %v1004_v36 = vpop.eup %1003 }
 0x2d2   : > { %v1006_v40 = vpop.eup %1005 }
 0x2d4   : > { %766 = vrot.lane.b32.xlu1 %v994_v4, %s1017_s11 }
 0x2d5   : > { %768 = vrot.lane.b32.xlu0 %v996_v6, %s1017_s11 }
 0x2d8   : > { %772 = vrot.lane.b32.xlu1 %v998_v11, %s1017_s11 }
 0x2d9   : > { %770 = vrot.lane.b32.xlu0 %v1000_v14, %s1017_s11 }
 0x2dc   : > { %601 = vrot.lane.b32.xlu1 %v590_v20, %s1022_s24 }
 0x2dd   : > { %599 = vrot.lane.b32.xlu0 %v589_v23, %s1022_s24 }
 0x2e0   : > { %700 = vrot.lane.b32.xlu1 %v1104_v13, %s1018_s16 }
 0x2e1   : > { %698 = vrot.lane.b32.xlu0 %v1106_v15, %s1018_s16 }
 0x2e4   : > { %704 = vrot.lane.b32.xlu1 %v1110_v19, %s1018_s16  ;;  %v1008_v19 = vpop.eup %1007 }
 0x2e5   : > { %702 = vrot.lane.b32.xlu0 %v1112_v22, %s1018_s16 }
 0x33a   : > { %v737_v25 = vpop.permute.xlu1 %736 }
 0x33b   : > { %v735_v27 = vpop.permute.xlu0 %734  ;;  %v747_v15 = vadd.f32 %v1004_v36, %v737_v25 }
 0x33c   : > { %v746_v37 = vadd.f32 %v1002_v35, %v735_v27 }
 0x33e   : > { %v741_v29 = vpop.permute.xlu1 %740 }
 0x33f   : > { %v739_v30 = vpop.permute.xlu0 %738  ;;  %v749_v42 = vadd.f32 %v1006_v40, %v741_v29 }
 0x340   : > { %v748_v22 = vadd.f32 %v1008_v19, %v739_v30 }
 0x342   : > { %v596_v32 = vpop.permute.xlu1 %595 }
 0x343   : > { %v598_v34 = vpop.permute.xlu0 %597  ;;  %v607_v49 = vadd.f32 %v596_v32, %v547_v44 }
 0x344   : > { %v608_v46 = vadd.f32 %v598_v34, %v548_v43 }
 0x345   : > { %v611_v57 = vmul.f32 0.5, %v607_v49 }
 0x346   : > { %v767_v38 = vpop.permute.xlu1 %766  ;;  %v612_v55 = vmul.f32 0.5, %v608_v46 }
 0x347   : > { %v778_v13 = vmul.f32 %v767_v38, %v746_v37  ;;  %v769_v39 = vpop.permute.xlu0 %768 }
 0x348   : > { %v779_v41 = vmul.f32 %v769_v39, %v747_v15 }
 0x349   : > { %786 = vrot.lane.b32.xlu1 %v778_v13, %s1018_s16 }
 0x34a   : > { %v773_v45 = vpop.permute.xlu1 %772  ;;  %788 = vrot.lane.b32.xlu0 %v779_v41, %s1018_s16 }
 0x34b   : > { %v781_v47 = vmul.f32 %v773_v45, %v749_v42  ;;  %v771_v48 = vpop.permute.xlu0 %770 }
 0x34c   : > { %v780_v50 = vmul.f32 %v771_v48, %v748_v22 }
 0x34d   : > { %792 = vrot.lane.b32.xlu1 %v781_v47, %s1018_s16 }
 0x34e   : > { %v602_v54 = vpop.permute.xlu1 %601  ;;  %790 = vrot.lane.b32.xlu0 %v780_v50, %s1018_s16 }
 0x34f   : > { %v610_v56 = vadd.f32 %v602_v54, %v550_v52  ;;  %v600_v53 = vpop.permute.xlu0 %599 }
 0x350   : > { %v609_v59 = vadd.f32 %v600_v53, %v549_v51 }
 0x351   : > { %621 = vrot.lane.b32.xlu1 %v612_v55, %s1021_s23  ;;  %v614_v60 = vmul.f32 0.5, %v610_v56  ;;  %v827_v55 = vand.u32 127, %v647_v10 }
 0x352   : > { %619 = vrot.lane.b32.xlu0 %v611_v57, %s1021_s23  ;;  %v613_v62 = vmul.f32 0.5, %v609_v59  ;;  %v701_v58 = vpop.permute.xlu1 %700 }
 0x353   : > { %v699_v63 = vpop.permute.xlu0 %698  ;;  %v711_v1 = vsub.f32 %v1163_v24, %v701_v58  ;;  %vm829_vm3 = vcmp.eq.s32.totalorder %v827_v55, 1  ;;  %vm828_vm4 = vcmp.eq.s32.totalorder %v827_v55, 0 }
 0x354   : > { %v710_v61 = vsub.f32 %v1160_v21, %v699_v63 }
 0x355   : > { %625 = vrot.lane.b32.xlu1 %v614_v60, %s1021_s23 }
 0x356   : > { %623 = vrot.lane.b32.xlu0 %v613_v62, %s1021_s23  ;;  %v705_v0 = vpop.permute.xlu1 %704 }
 0x357   : > { %v703_v3 = vpop.permute.xlu0 %702  ;;  %v713_v9 = vsub.f32 %v1168_v31, %v705_v0 }
 0x358   : > { %v712_v12 = vsub.f32 %v1171_v33, %v703_v3 }
 0x3bb   : > { %v787_v2 = vpop.permute.xlu1 %786 }
 0x3bc   : > { %v798_v4 = vadd.f32 %v787_v2, %v710_v61  ;;  %v789_v6 = vpop.permute.xlu0 %788 }
 0x3bd   : > { %v799_v7 = vadd.f32 %v789_v6, %v711_v1 }
 0x3be   : > { %v920_v11 = vadd.f32 -1.0, %v798_v4 }
 0x3bf   : > { %v921_v14 = vadd.f32 -1.0, %v799_v7  ;;  %v793_v16 = vpop.permute.xlu1 %792 }
 0x3c0   : > { %v806_v17 = vmul.f32 0.5, %v920_v11  ;;  %v801_v18 = vadd.f32 %v793_v16, %v713_v9  ;;  %v791_v20 = vpop.permute.xlu0 %790 }
 0x3c1   : > { %v807_v23 = vmul.f32 0.5, %v921_v14  ;;  %v800_v5 = vadd.f32 %v791_v20, %v712_v12 }
 0x3c2   : > { %v923_v8 = vadd.f32 -1.0, %v801_v18  ;;  %v810_v21 = vsel %vm449_vm1, %v806_v17, 0.0 }
 0x3c3   : > { %v811_v24 = vsel %vm449_vm1, %v807_v23, 0.0  ;;  %v922_v25 = vadd.f32 -1.0, %v800_v5  ;;  %v622_v26 = vpop.permute.xlu1 %621 }
 0x3c4   : > { %v620_v27 = vpop.permute.xlu0 %619  ;;  %v809_v28 = vmul.f32 0.5, %v923_v8  ;;  %v632_v29 = vsel %vm291_vm0, %v622_v26, 0.0  ;;  %v812_v30 = vadd.f32 %v811_v24, %v810_v21 }
 0x3c5   : > { %v808_v31 = vmul.f32 0.5, %v922_v25  ;;  %v631_v33 = vsel %vm291_vm0, %v620_v27, 0.0 }
 0x3c6   : > { %v633_v34 = vadd.f32 %v632_v29, %v631_v33  ;;  %v815_v38 = vsel %vm449_vm1, %v809_v28, 0.0 }
 0x3c7   : > { %v813_v32 = vsel %vm449_vm1, %v808_v31, 0.0  ;;  %v626_v35 = vpop.permute.xlu1 %625 }
 0x3c8   : > { %v624_v36 = vpop.permute.xlu0 %623  ;;  %v814_v37 = vadd.f32 %v813_v32, %v812_v30  ;;  %v636_v40 = vsel %vm291_vm0, %v626_v35, 0.0 }
 0x3c9   : > { %v634_v15 = vsel %vm291_vm0, %v624_v36, 0.0 }
 0x3ca   : > { %v635_v13 = vadd.f32 %v634_v15, %v633_v34  ;;  %v816_v39 = vadd.f32 %v815_v38, %v814_v37 }
 0x3cc   : > { %817 = vadd.xlane.f32.xlu1 %v816_v39  ;;  %v637_v41 = vadd.f32 %v636_v40, %v635_v13 }
 0x3ce   : > { %638 = vadd.xlane.f32.xlu0 %v637_v41 }
 0x459   : > { %v818_v19 = vpop.xlane.xlu1 %817 }
 0x45a   : > { %v819_v42 = vrot.slane %v818_v19, 4 }
 0x45b   : > { %v639_v43 = vpop.xlane.xlu0 %638 }
 0x45c   : > { %v820_v22 = vadd.f32 %v819_v42, %v818_v19  ;;  %v640_v44 = vrot.slane %v639_v43, 4 }
 0x45e   : > { %v821_v45 = vrot.slane %v820_v22, 2  ;;  %v641_v46 = vadd.f32 %v640_v44, %v639_v43 }
 0x460   : > { %v822_v47 = vadd.f32 %v821_v45, %v820_v22  ;;  %v642_v48 = vrot.slane %v641_v46, 2 }
 0x462   : > { %v643_v49 = vadd.f32 %v642_v48, %v641_v46  ;;  %v823_v50 = vrot.slane %v822_v47, 1 }
 0x464   : > { %v644_v52 = vrot.slane %v643_v49, 1  ;;  %v824_v51 = vadd.f32 %v823_v50, %v822_v47 }
 0x466   : > { %v645_v54 = vadd.f32 %v644_v52, %v643_v49 }
 0x468   : > { %959 = vpush %v645_v54 }
 0x469   : > { %961 = vpush %v824_v51 }
 0x499   : > { %s960_s26 = spop %959 }
 0x49a   : > { %v832_v56 = vstv %s960_s26  ;;  %s962_s27 = spop %961 }
 0x49b   : > { %v830_v53 = vstv %s962_s27 }
 0x49c   : > { %v831_v57 = vsel %vm829_vm3, %v830_v53, 0.0 }
 0x49d   : > { %v833_v59 = vsel %vm828_vm4, %v832_v56, %v831_v57 }
 0x49e   : > { %834 = vst [vmem:[%s273_s30] sm:$0xff] %v833_v59 }
 0x49f PF: > { %s16_s21 = sadd.s32 1, %s1015_s21  }
 0x4a0   : > { %p13_p5 = scmp.ge.s32.totalorder %s16_s21, 4  }
 0x4a2   :  { %15 = sbr.rel (!%p13_p5) target bundleno = 1 (0x1), region = 77 }

</bundles_post_ra>
